<compile_context>
chip_gen: v5e
topology: v5e:2x2
jax: 0.10.0
libtpu: 0.0.40
codegen_flags: <defaults>
</compile_context>

<pallas_src>
import jax
import jax.numpy as jnp
from jax.experimental import pallas as pl
from jax.experimental.pallas import tpu as pltpu


def _round_up(x, mult):
    return ((x + mult - 1) // mult) * mult


def _vmem_capacity_bytes():
    try:
        return int(pltpu.get_tpu_info().vmem_capacity_bytes)
    except Exception:
        return 64 * 1024 * 1024  # conservative: assume v7x (smallest VMEM)


def _bimap_block(x_ref, w_ref, o_ref, b_ref):
    """One grid step: a block of Bt batch matrices.

    x_ref : (Bt, n, n)   input block (X.dtype)
    w_ref : (n, m)       W (cast to X.dtype in the wrapper; zero-padded)
    o_ref : (Bt, m, m)   output block
    b_ref : (m, m) f32   bias, or None (no-bias kernel variant)
    """
    Bt, n, _ = x_ref.shape
    m = w_ref.shape[1]

    x = x_ref[...]
    w = w_ref[...]

    # First contraction:  T[b, p, j] = sum_q X[b, p, q] * W[q, j]
    # One (Bt*n, n) @ (n, m) MXU matmul, W stationary, f32 accumulation.
    t = jnp.dot(x.reshape(Bt * n, n), w, preferred_element_type=jnp.float32)
    # Downcast matches module semantics (matmuls in X.dtype); no-op for f32.
    t = t.reshape(Bt, n, m).astype(x.dtype)

    # Per-block XLU transpose (overlaps MXU): T'[b, j, p] = T[b, p, j]
    t_t = jnp.swapaxes(t, 1, 2).reshape(Bt * m, n)

    # Second contraction, same stationary W:
    #   Yt[(b, j), i] = sum_p T[b, p, j] * W[p, i] = Y[b, i, j]
    yt = jnp.dot(t_t, w, preferred_element_type=jnp.float32).reshape(Bt, m, m)

    # Yt[b, j, i] == Y[b, i, j]: small per-block (m, m) transpose back.
    y = jnp.swapaxes(yt, 1, 2)

    if b_ref is not None:
        y = y + b_ref[...]  # f32 bias add in the accumulator
    o_ref[...] = y.astype(o_ref.dtype)


def _bimap_kernel_bias(x_ref, w_ref, b_ref, o_ref):
    _bimap_block(x_ref, w_ref, o_ref, b_ref)


def _bimap_kernel_nobias(x_ref, w_ref, o_ref):
    _bimap_block(x_ref, w_ref, o_ref, None)


def equivariant_bimap(X, W, b=None, *, block_batch=None):
    """Y[..., :, :] = W^T @ X[..., :, :] @ W (+ b).

    X: (..., n, n), W: (n, m), b: (m, m) or None.  Returns (..., m, m).
    """
    *lead, n, n2 = X.shape
    assert n == n2, "X must be a batch of square (input_dim, input_dim) matrices"
    n_w, m = W.shape
    assert n == n_w, "input_dim mismatch between X and W"

    B = 1
    for d in lead:
        B *= d
    Xb = X.reshape(B, n, n)

    # Module semantics: matmuls run in X's dtype (accumulation stays f32).
    W = W.astype(X.dtype)

    itemsize = jnp.dtype(X.dtype).itemsize
    sublane = max(8, 32 // itemsize)  # 8 (f32) / 16 (bf16) / 32 (int8)

    # n padded to the sublane tile -> layout-trivial major-dim merges.
    n_p = _round_up(n, sublane)
    # m padded to 128 lanes when small (lane-dense stores), else sublane mult.
    m_p = 128 if m < 128 else _round_up(m, sublane)

    if n_p != n:
        # Zero rows/cols contribute nothing to W^T X W; result stays exact.
        Xb = jnp.pad(Xb, ((0, 0), (0, n_p - n), (0, n_p - n)))
    if n_p != n or m_p != m:
        W = jnp.pad(W, ((0, n_p - n), (0, m_p - m)))

    has_bias = b is not None
    if has_bias:
        bias = b.astype(jnp.float32)
        if m_p != m:
            bias = jnp.pad(bias, ((0, m_p - m), (0, m_p - m)))

    # ---- auto-size the batch block from the VMEM budget --------------------
    vmem_phys = _vmem_capacity_bytes()
    vmem_limit = (vmem_phys * 3) // 4        # ~48 MiB on v7x, ~96 MiB on v5e/v6e
    per_b = (2 * n_p * n_p * itemsize        # double-buffered X block
             + 2 * m_p * m_p * itemsize      # double-buffered out block
             + n_p * m_p * (4 + itemsize)    # T (f32) + T' (X.dtype)
             + 2 * m_p * m_p * 4)            # Yt + Y f32 intermediates
    budget = int(vmem_limit * 0.55)          # headroom: W, bias, compiler scratch
    Bt = max(1, budget // per_b)
    if block_batch is not None:
        Bt = max(1, min(Bt, int(block_batch)))
    Bt = min(Bt, B)
    if B >= 2:
        # >= 2 grid steps so both v7x TensorCores get work (no-op on v5e/v6e).
        Bt = min(Bt, -(-B // 2))
    grid = (pl.cdiv(B, Bt),)                 # ragged last block is masked

    kernel = _bimap_kernel_bias if has_bias else _bimap_kernel_nobias
    in_specs = [
        pl.BlockSpec((Bt, n_p, n_p), lambda i: (i, 0, 0)),
        pl.BlockSpec((n_p, m_p), lambda i: (0, 0)),
    ]
    args = [Xb, W]
    if has_bias:
        in_specs.append(pl.BlockSpec((m_p, m_p), lambda i: (0, 0)))
        args.append(bias)

    out = pl.pallas_call(
        kernel,
        out_shape=jax.ShapeDtypeStruct((B, m_p, m_p), X.dtype),
        grid=grid,
        in_specs=in_specs,
        out_specs=pl.BlockSpec((Bt, m_p, m_p), lambda i: (i, 0, 0)),
        compiler_params=pltpu.CompilerParams(
            dimension_semantics=("parallel",),
            vmem_limit_bytes=int(vmem_limit),
        ),
    )(*args)

    if m_p != m:
        out = out[:, :m, :m]  # only extra pass; skipped when m already aligned
    return out.reshape(*lead, m, m)


def make_orthogonal_weight(key, input_dim, output_dim, dtype=jnp.float32):
    """Deterministic orthogonal init (mirrors nn.init.orthogonal_)."""
    a = jax.random.normal(key, (max(input_dim, output_dim),
                                min(input_dim, output_dim)), dtype=jnp.float32)
    q, r = jnp.linalg.qr(a)
    d = jnp.diag(r)
    q = q * jnp.where(d >= 0, 1.0, -1.0)[None, :]
    if input_dim < output_dim:
        q = q.T
    return q[:input_dim, :output_dim].astype(dtype)


# TODO(synk): orthogonal_regularizer() is a training-time loss on W only (no X);
# it is not part of the forward pass and is left to plain XLA.

if __name__ == "__main__":
    input_dim = 32
    output_dim = 16
    batch = 2

    key = jax.random.PRNGKey(0)
    k_w, k_x, k_b = jax.random.split(key, 3)

    W = make_orthogonal_weight(k_w, input_dim, output_dim)

    # General (non-symmetric) matrices so index-order bugs are caught.
    X = jax.random.normal(k_x, (batch, input_dim, input_dim), jnp.float32)

    # Reference:  Y[b, i, j] = sum_{p,q} W[p, i] * X[b, p, q] * W[q, j]
    def ref(X, W, b=None):
        Y = jnp.einsum("pi,bpq,qj->bij", W, X, W,
                       precision=jax.lax.Precision.HIGHEST)
        return Y if b is None else Y + b

    # bias=False path (module default)
    Y = equivariant_bimap(X, W, None)
    jax.block_until_ready(Y)
    assert Y.shape == (batch, output_dim, output_dim)
    assert jnp.allclose(Y, ref(X, W), atol=1e-3, rtol=1e-3)

    # bias=True path
    b = 0.1 * jax.random.normal(k_b, (output_dim, output_dim), jnp.float32)
    Yb = equivariant_bimap(X, W, b)
    jax.block_until_ready(Yb)
    assert jnp.allclose(Yb, ref(X, W, b), atol=1e-3, rtol=1e-3)

    print("KERNEL_OK")
</pallas_src>

<mosaic_0001>
module attributes {stable_mosaic.version = 11 : i64} {
  func.func @_bimap_kernel_nobias(%arg0: i32, %arg1: memref<1x32x32xf32, #tpu.memory_space<vmem>>, %arg2: memref<32x128xf32, #tpu.memory_space<vmem>>, %arg3: memref<1x128x128xf32, #tpu.memory_space<vmem>>) attributes {dimension_semantics = [#tpu.dimension_semantics<parallel>], iteration_bounds = array<i64: 2>, scalar_prefetch = 0 : i64, scratch_operands = 0 : i64, tpu.core_type = #tpu.core_type<tc>, window_params = [{transform_indices = @transform_0, window_bounds = array<i64: 1, 32, 32>}, {pipeline_mode = #tpu.pipeline_mode<synchronous>, transform_indices = @transform_1, window_bounds = array<i64: 32, 128>}, {transform_indices = @transform_2, window_bounds = array<i64: 1, 128, 128>}]} {
    %c0 = arith.constant 0 : index
    %c0_0 = arith.constant 0 : index
    %c0_1 = arith.constant 0 : index
    %0 = vector.load %arg1[%c0, %c0_0, %c0_1] : memref<1x32x32xf32, #tpu.memory_space<vmem>>, vector<1x32x32xf32>
    %c0_2 = arith.constant 0 : index
    %c0_3 = arith.constant 0 : index
    %1 = vector.load %arg2[%c0_2, %c0_3] : memref<32x128xf32, #tpu.memory_space<vmem>>, vector<32x128xf32>
    %2 = vector.shape_cast %0 : vector<1x32x32xf32> to vector<32x32xf32>
    %cst = arith.constant dense<0.000000e+00> : vector<32x128xf32>
    %3 = tpu.matmul %2, %1, %cst {dimension_numbers = #tpu.dot_dimension_numbers<[1], [0], [0], [1], [0, 0, 1, 1], [], []>} : vector<32x32xf32>, vector<32x128xf32>, vector<32x128xf32> -> vector<32x128xf32>
    %4 = vector.shape_cast %3 : vector<32x128xf32> to vector<1x32x128xf32>
    %5 = tpu.transpose %4, [0, 2, 1] : vector<1x32x128xf32> -> vector<1x128x32xf32>
    %6 = vector.shape_cast %5 : vector<1x128x32xf32> to vector<128x32xf32>
    %cst_4 = arith.constant dense<0.000000e+00> : vector<128x128xf32>
    %7 = tpu.matmul %6, %1, %cst_4 {dimension_numbers = #tpu.dot_dimension_numbers<[1], [0], [0], [1], [0, 0, 1, 1], [], []>} : vector<128x32xf32>, vector<32x128xf32>, vector<128x128xf32> -> vector<128x128xf32>
    %8 = vector.shape_cast %7 : vector<128x128xf32> to vector<1x128x128xf32>
    %9 = tpu.transpose %8, [0, 2, 1] : vector<1x128x128xf32> -> vector<1x128x128xf32>
    %c0_5 = arith.constant 0 : index
    %c0_6 = arith.constant 0 : index
    %c0_7 = arith.constant 0 : index
    %10 = vector.load %arg3[%c0_5, %c0_6, %c0_7] : memref<1x128x128xf32, #tpu.memory_space<vmem>>, vector<1x128x128xf32>
    tpu.vector_store %arg3[%c0_5, %c0_6, %c0_7], %9 {strides = array<i32>} : memref<1x128x128xf32, #tpu.memory_space<vmem>>, vector<1x128x128xf32>,
    return
  }
  func.func @transform_0(%arg0: i32) -> (i32, i32, i32) {
    %c0_i32 = arith.constant 0 : i32
    %c0_i32_0 = arith.constant 0 : i32
    %c0_i32_1 = arith.constant 0 : i32
    return %arg0, %c0_i32, %c0_i32_0 : i32, i32, i32
  }
  func.func @transform_1(%arg0: i32) -> (i32, i32) {
    %c0_i32 = arith.constant 0 : i32
    %c0_i32_0 = arith.constant 0 : i32
    %c0_i32_1 = arith.constant 0 : i32
    return %c0_i32, %c0_i32_0 : i32, i32
  }
  func.func @transform_2(%arg0: i32) -> (i32, i32, i32) {
    %c0_i32 = arith.constant 0 : i32
    %c0_i32_0 = arith.constant 0 : i32
    %c0_i32_1 = arith.constant 0 : i32
    return %arg0, %c0_i32, %c0_i32_0 : i32, i32, i32
  }
}

</mosaic_0001>

<bundles_post_ra>
// kernel: tpu_custom_call.1
= control target key start
LH: loop header
LB: loop body
LE: loop exit
PB: predicated region body
PF: predicated region fallthrough
CT: control target
= control target key end

     0   :  { %7 = vsyncpa [#allocation3], 0  ;;  %s977_s0 = inlined_call_operand.hbm [shape: f32[2,32,32], index: 0, kind: input, shape index: {}]   ;;  %s978_s1 = inlined_call_operand.hbm [shape: f32[32,128], index: 1, kind: input, shape index: {}]   ;;  %s979_s2 = inlined_call_operand.hbm [shape: f32[2,128,128], index: 2, kind: output, shape index: {}]  }
   0x1   :  { %9 = vsyncpa [#allocation3 + $0x1], 0 }
   0x2   :  { %10 = vsyncpa [#allocation6], 0 }
   0x3   :  { %11 = vsyncpa [#allocation4], 0 }
   0x4   :  { %13 = vsyncpa [#allocation4 + $0x1], 0  ;;  %s787_s9 = smov 0   ;;  %s789_s10 = smov 0  }
   0x5   :  { %s791_s11 = smov 0   ;;  %s793_s12 = smov 0  }
   0x6 LB: > { %s808_s13 = sadd.s32 4294967295, %s765_s12   ;;  %s523_s14 = sadd.s32 4294967294, %s765_s12   ;;  %s765_s12 = sphi %s793_s12, %s989_s12   ;;  %s761_s11 = sphi %s791_s11, %s988_s11   ;;  %s757_s10 = sphi %s789_s10, %s987_s10   ;;  %s753_s9 = sphi %s787_s9, %s986_s9  }
   0x7   : > { %p39_p0 = scmp.ne.s32.totalorder %s757_s10, %s753_s9  ;;  %p40_p1 = scmp.eq.s32.totalorder %s808_s13, 0 }
   0x8   : > { %p84_p2 = scmp.eq.s32.totalorder %s808_s13, 1  ;;  %p90_p3 = scmp.eq.s32.totalorder %s523_s14, 1 }
   0x9   : > { %p817_p4 = por %p40_p1, %p39_p0  ;;  %p524_p5 = scmp.ge.s32.totalorder %s765_s12, 1 }
   0xa   : > { %p822_p6 = por %p90_p3, %p39_p0  ;;  %p97_p7 = scmp.lt.s32.totalorder %s765_s12, 3 }
   0xb   : > { %s108_s19 = sshll.u32 %s978_s1, 4  ;;  %s767_s21 = smov [#allocation5]   ;;  %s109_s19 = int_to_ptr.hbm [resolvable:$true] %s108_s19 }
   0xc   : > { %p830_p8 = pnand %p524_p5, %p97_p7  ;;  %s110_s22 = sshll.u32 %s767_s21, 4  ;;  %s111_s22 = int_to_ptr.vmem [resolvable:$true] %s110_s22 }
   0xd   : > { %s840_s23 = sadd.s32 1, %s765_s12   ;;  %s768_s24 = smov 128  }
   0xe   : > { %p581_p9 = pneg %p830_p8  ;;  %s769_s25 = smov 8  }
   0xf   : > { %s23_s26 = ssub.s32 %s765_s12, %s840_s23  ;;  %s26_s27 = sadd.s32 1, %s761_s11 }
  0x10   : > { %p582_p10 = pnand %p581_p9, %p40_p1  ;;  %p24_p12 = scmp.eq.s32.totalorder %s23_s26, 0 }
  0x11   : > { %p33_p13 = scmp.ne.s32.totalorder %s761_s11, %s757_s10  ;;  %p34_p0 = scmp.eq.s32.totalorder %s765_s12, 0 }
  0x12   : > { %584 = dma.hbm_to_vmem [thread:$0]  (!%p582_p10), %s109_s19, 512, %s111_s22, [#allocation6], %s768_s24, %s768_s24, %s769_s25  }
  0x13   : > { %s852_s28 = scalar_select %p24_p12, %s761_s11, %s26_s27  }
  0x14   : > { %p856_p3 = por %p84_p2, %p33_p13  ;;  %p594_p5 = scmp.lt.s32.totalorder %s765_s12, 2 }
  0x15   : > { %s124_s30 = sand.u32 1, %s761_s11   ;;  %s559_s3 = sshll.u32 %s765_s12, 5 }
  0x16   : > { %p35_p7 = por %p34_p0, %p33_p13  ;;  %s527_s4 = sshll.u32 %s124_s30, 5 }
  0x17   : > { %s133_s7 = scalar_lea.hbm %s977_s0, %s559_s3  ;;  %s128_s14 = scalar_lea.vmem [#allocation2], %s527_s4 }
  0x18   : > { %s134_s8 = sshll.u32 %s133_s7, 4  ;;  %s136_s17 = sshll.u32 %s128_s14, 4  ;;  %s135_s8 = int_to_ptr.hbm [resolvable:$true] %s134_s8  ;;  %s137_s17 = int_to_ptr.vmem [resolvable:$true] %s136_s17 }
  0x19   : > { %p866_p9 = pnand %p594_p5, %p35_p7  ;;  %s125_s19 = scalar_lea.sflag [#allocation3], %s124_s30 }
  0x1a   : > { %s665_s21 = sshra.s32 %s135_s8, 4  ;;  %s672_s3 = scalar_lea.hbm %s977_s0, 64  ;;  %s666_s21 = int_to_ptr.hbm [resolvable:$true] %s665_s21 }
  0x1b   : > { %s667_s22 = scalar_lea.hbm %s666_s21, 32  ;;  %p669_p10 = pneg %p866_p9 }
  0x1c   : > { %p668_p2 = scmp.ne.s32.totalorder %s666_s21, %s667_s22  ;;  %p673_p0 = scmp.lt.s32.totalorder %s666_s21, %s977_s0 }
  0x1d   : > { %p674_p5 = scmp.lt.s32.totalorder %s672_s3, %s667_s22 }
  0x1e   : > { %p670_p12 = pnand %p669_p10, %p668_p2 }
  0x1f   : > { %p675_p7 = por %p674_p5, %p673_p0 }
  0x20   : > { %p671_p13 = pneg %p670_p12 }
  0x22   : > { %p676_p11 = pnand %p675_p7, %p671_p13 }
  0x24   : > { %679 = shalt.err (!%p676_p11)
}
  0x25   : > { %588 = dma.hbm_to_vmem [thread:$0]  (!%p866_p9), %s135_s8, 512, %s137_s17, %s125_s19, %s768_s24, %s768_s24, %s769_s25  }
  0x26   : > { %148 = sbr.rel (%p830_p8) target bundleno = 766 (0x2fe), region = 28  ;;  %s886_s30 = sand.u32 (!%p830_p8), 1, %s757_s10  }
  0x27   : > { %s531_s6 = sshll.u32 (!%p830_p8), %s886_s30, 5  ;;  %s151_s7 = scalar_lea.sflag (!%p830_p8), [#allocation3], %s886_s30 }
  0x28   : > { %s890_s14 = scalar_lea.vmem (!%p830_p8), [#allocation2], %s531_s6 }
  0x2b   : > { %740 = dma.done.wait (%p817_p4), %s151_s7, 512  }
  0x2c   : > { %742 = vsyncadd (%p817_p4), %s151_s7, 4294966784 }
  0x2d   : > { %744 = dma.done.wait (%p40_p1), [#allocation6], 512  }
  0x2e   : > { %746 = vsyncadd (%p40_p1), [#allocation6], 4294966784  ;;  %v188_v0 = vld [vmem:[#allocation5 + $0x18] sm:$0xff]  ;;  %v187_v1 = vld [vmem:[#allocation5 + $0x10] sm:$0xff]  ;;  %vm189_vm0 = vcmask 261120   ;;  %s533_s15 = sshll.u32 %s886_s30, 7 }
  0x2f   : > { %214 = vmatpush.msra.mxu0 %v188_v0  ;;  %561 = vmatpush.msra.mxu1 %v188_v0  ;;  %v186_v2 = vld [vmem:[#allocation5 + $0x8] sm:$0xff]  ;;  %v185_v3 = vld [vmem:[#allocation5] sm:$0xff]  ;;  %v183_v6 = vld [vmem:[%s890_s14 + $0x10] sm:$0xff]  ;;  %s925_s20 = scalar_lea.vmem [#allocation7], %s533_s15  ;;  %s560_s24 = sshll.u32 %s808_s13, 7 }
  0x30   : > { %562 = vmatpush.msra.mxu2 %v188_v0  ;;  %563 = vmatpush.msra.mxu3 %v188_v0  ;;  %v181_v4 = vld [vmem:[%s890_s14] sm:$0xff]  ;;  %v182_v5 = vld [vmem:[%s890_s14 + $0x8] sm:$0xff]  ;;  %v184_v7 = vld [vmem:[%s890_s14 + $0x18] sm:$0xff]  ;;  %s436_s17 = scalar_lea.hbm %s979_s2, %s560_s24  ;;  %s437_s18 = sshll.u32 %s925_s20, 4  ;;  %s438_s18 = int_to_ptr.vmem [resolvable:$true] %s437_s18 }
  0x31   : > { %215 = vmatpush.msra.mxu0 %v187_v1  ;;  %564 = vmatpush.msra.mxu1 %v187_v1  ;;  %s439_s19 = sshll.u32 %s436_s17, 4  ;;  %s425_s21 = scalar_lea.sflag [#allocation4], %s886_s30  ;;  %s440_s19 = int_to_ptr.hbm [resolvable:$true] %s439_s19 }
  0x32   : > { %565 = vmatpush.msra.mxu2 %v187_v1  ;;  %566 = vmatpush.msra.mxu3 %v187_v1  ;;  %s709_s22 = sshra.s32 %s440_s19, 4  ;;  %s715_s3 = scalar_lea.hbm %s979_s2, 256  ;;  %s710_s22 = int_to_ptr.hbm [resolvable:$true] %s709_s22 }
  0x33   : > { %216 = vmatpush.msra.mxu0 %v186_v2  ;;  %567 = vmatpush.msra.mxu1 %v186_v2  ;;  %s711_s26 = scalar_lea.hbm %s710_s22, 128  ;;  %p716_p11 = scmp.lt.s32.totalorder %s710_s22, %s979_s2 }
  0x34   : > { %568 = vmatpush.msra.mxu2 %v186_v2  ;;  %569 = vmatpush.msra.mxu3 %v186_v2  ;;  %p712_p1 = scmp.ne.s32.totalorder %s710_s22, %s711_s26  ;;  %p717_p9 = scmp.lt.s32.totalorder %s715_s3, %s711_s26 }
  0x35   : > { %217 = vmatpush.msra.mxu0 %v185_v3  ;;  %570 = vmatpush.msra.mxu1 %v185_v3 }
  0x36   : > { %534 = vmatmul.msk.f32.vlgmr.msra.gmra.mxu0 %vm189_vm0, %v181_v4  ;;  %571 = vmatpush.msra.mxu2 %v185_v3  ;;  %p713_p4 = pnand %p712_p1, %p856_p3  ;;  %p718_p2 = por %p717_p9, %p716_p11 }
  0x37   : > { %323 = vmatpush.msrb.mxu0 %v188_v0  ;;  %572 = vmatpush.msra.mxu3 %v185_v3 }
  0x38   : > { %p714_p8 = pneg %p713_p4 }
  0x39   : > { %324 = vmatpush.msrb.mxu0 %v187_v1 }
  0x3a   : > { %p719_p10 = pnand %p718_p2, %p714_p8 }
  0x3b   : > { %325 = vmatpush.msrb.mxu0 %v186_v2 }
  0x3d   : > { %326 = vmatpush.msrb.mxu0 %v185_v3 }
  0x3e   : > { %535 = vmatmul.msk.f32.gmra.mxu0 %vm189_vm0, %v182_v5 }
  0x46   : > { %536 = vmatmul.msk.f32.gmra.mxu0 %vm189_vm0, %v183_v6 }
  0x4e   : > { %537 = vmatmul.msk.f32.gmra.mxu0 %vm189_vm0, %v184_v7 }
  0xb3   : > { %v219_v8 = vpop.f32.mrf.mxu0 }
  0xb4   : > { %231 = vxpose.xlu0.b32.start [1/4] (short) %v219_v8, 128 }
  0xbb   : > { %v222_v9 = vpop.f32.mrf.mxu0 }
  0xbc   : > { %232 = vxpose.xlu0.b32.cont [2/4] (short) %v222_v9, 128 }
  0xc3   : > { %v225_v10 = vpop.f32.mrf.mxu0 }
  0xc4   : > { %233 = vxpose.xlu0.b32.cont [3/4] (short) %v225_v10, 128 }
  0xcb   : > { %v228_v11 = vpop.f32.mrf.mxu0 }
  0xcc   : > { %234 = vxpose.xlu0.b32.end [4/4] (short) %v228_v11, 128 }
 0x158   : > { %v247_v12 = vpop.trf.xlu0 }
 0x159   : > { %538 = vmatmul.msk.f32.vlgmr.msrb.gmra.mxu0 %vm189_vm0, %v247_v12 }
 0x160   : > { %v248_v13 = vpop.trf.xlu0 }
 0x161   : > { %539 = vmatmul.msk.f32.vlgmr.msra.gmra.mxu1 %vm189_vm0, %v248_v13 }
 0x168   : > { %v249_v14 = vpop.trf.xlu0 }
 0x169   : > { %540 = vmatmul.msk.f32.gmra.mxu1 %vm189_vm0, %v249_v14 }
 0x170   : > { %v250_v15 = vpop.trf.xlu0 }
 0x171   : > { %541 = vmatmul.msk.f32.gmra.mxu1 %vm189_vm0, %v250_v15 }
 0x178   : > { %v251_v16 = vpop.trf.xlu0 }
 0x179   : > { %542 = vmatmul.msk.f32.gmra.mxu1 %vm189_vm0, %v251_v16 }
 0x180   : > { %v252_v17 = vpop.trf.xlu0 }
 0x181   : > { %543 = vmatmul.msk.f32.gmra.mxu1 %vm189_vm0, %v252_v17 }
 0x188   : > { %v253_v18 = vpop.trf.xlu0 }
 0x189   : > { %544 = vmatmul.msk.f32.vlgmr.msra.gmra.mxu2 %vm189_vm0, %v253_v18 }
 0x190   : > { %v254_v19 = vpop.trf.xlu0 }
 0x191   : > { %545 = vmatmul.msk.f32.gmra.mxu2 %vm189_vm0, %v254_v19 }
 0x198   : > { %v255_v20 = vpop.trf.xlu0 }
 0x199   : > { %546 = vmatmul.msk.f32.gmra.mxu2 %vm189_vm0, %v255_v20 }
 0x1a0   : > { %v256_v21 = vpop.trf.xlu0 }
 0x1a1   : > { %547 = vmatmul.msk.f32.gmra.mxu2 %vm189_vm0, %v256_v21 }
 0x1a8   : > { %v257_v22 = vpop.trf.xlu0 }
 0x1a9   : > { %548 = vmatmul.msk.f32.gmra.mxu2 %vm189_vm0, %v257_v22 }
 0x1b0   : > { %v258_v23 = vpop.trf.xlu0 }
 0x1b1   : > { %549 = vmatmul.msk.f32.vlgmr.msra.gmra.mxu3 %vm189_vm0, %v258_v23 }
 0x1b8   : > { %v259_v24 = vpop.trf.xlu0 }
 0x1b9   : > { %550 = vmatmul.msk.f32.gmra.mxu3 %vm189_vm0, %v259_v24 }
 0x1c0   : > { %v260_v25 = vpop.trf.xlu0 }
 0x1c1   : > { %551 = vmatmul.msk.f32.gmra.mxu3 %vm189_vm0, %v260_v25 }
 0x1c8   : > { %v261_v26 = vpop.trf.xlu0 }
 0x1c9   : > { %552 = vmatmul.msk.f32.gmra.mxu3 %vm189_vm0, %v261_v26 }
 0x1d0   : > { %v262_v27 = vpop.trf.xlu0 }
 0x1d1   : > { %553 = vmatmul.msk.f32.gmra.mxu3 %vm189_vm0, %v262_v27 }
 0x1d6   : > { %v328_v28 = vpop.f32.mrf.mxu0 }
 0x1d7   : > { %376 = vxpose.xlu1.b32.start [1/16] %v328_v28, 128 }
 0x1de   : > { %v331_v29 = vpop.f32.mrf.mxu1 }
 0x1df   : > { %377 = vxpose.xlu1.b32.cont [2/16] %v331_v29, 128 }
 0x1e6   : > { %v334_v30 = vpop.f32.mrf.mxu1 }
 0x1e7   : > { %378 = vxpose.xlu1.b32.cont [3/16] %v334_v30, 128 }
 0x1ee   : > { %v337_v31 = vpop.f32.mrf.mxu1 }
 0x1ef   : > { %379 = vxpose.xlu1.b32.cont [4/16] %v337_v31, 128 }
 0x1f6   : > { %v340_v32 = vpop.f32.mrf.mxu1 }
 0x1f7   : > { %380 = vxpose.xlu1.b32.cont [5/16] %v340_v32, 128 }
 0x1fe   : > { %v343_v33 = vpop.f32.mrf.mxu1 }
 0x1ff   : > { %381 = vxpose.xlu1.b32.cont [6/16] %v343_v33, 128 }
 0x20c   : > { %v346_v34 = vpop.f32.mrf.mxu2 }
 0x20d   : > { %382 = vxpose.xlu1.b32.cont [7/16] %v346_v34, 128 }
 0x214   : > { %v349_v35 = vpop.f32.mrf.mxu2 }
 0x215   : > { %383 = vxpose.xlu1.b32.cont [8/16] %v349_v35, 128 }
 0x21c   : > { %v352_v36 = vpop.f32.mrf.mxu2 }
 0x21d   : > { %384 = vxpose.xlu1.b32.cont [9/16] %v352_v36, 128 }
 0x224   : > { %v355_v37 = vpop.f32.mrf.mxu2 }
 0x225   : > { %385 = vxpose.xlu1.b32.cont [10/16] %v355_v37, 128 }
 0x22c   : > { %v358_v38 = vpop.f32.mrf.mxu2 }
 0x22d   : > { %386 = vxpose.xlu1.b32.cont [11/16] %v358_v38, 128 }
 0x234   : > { %v361_v39 = vpop.f32.mrf.mxu3 }
 0x235   : > { %387 = vxpose.xlu1.b32.cont [12/16] %v361_v39, 128 }
 0x23c   : > { %v364_v40 = vpop.f32.mrf.mxu3 }
 0x23d   : > { %388 = vxpose.xlu1.b32.cont [13/16] %v364_v40, 128 }
 0x244   : > { %v367_v41 = vpop.f32.mrf.mxu3 }
 0x245   : > { %389 = vxpose.xlu1.b32.cont [14/16] %v367_v41, 128 }
 0x24c   : > { %v370_v42 = vpop.f32.mrf.mxu3 }
 0x24d   : > { %390 = vxpose.xlu1.b32.cont [15/16] %v370_v42, 128 }
 0x254   : > { %v373_v43 = vpop.f32.mrf.mxu3 }
 0x255   : > { %391 = vxpose.xlu1.b32.end [16/16] %v373_v43, 128 }
 0x281   : > { %v392_v44 = vpop.trf.xlu1 }
 0x282   : > { %408 = vst [vmem:[%s925_s20] sm:$0xff] %v392_v44 }
 0x289   : > { %v393_v45 = vpop.trf.xlu1 }
 0x28a   : > { %409 = vst [vmem:[%s925_s20 + $0x8] sm:$0xff] %v393_v45 }
 0x291   : > { %v394_v46 = vpop.trf.xlu1 }
 0x292   : > { %410 = vst [vmem:[%s925_s20 + $0x10] sm:$0xff] %v394_v46 }
 0x299   : > { %v395_v47 = vpop.trf.xlu1 }
 0x29a   : > { %411 = vst [vmem:[%s925_s20 + $0x18] sm:$0xff] %v395_v47 }
 0x2a1   : > { %v396_v48 = vpop.trf.xlu1 }
 0x2a2   : > { %412 = vst [vmem:[%s925_s20 + $0x20] sm:$0xff] %v396_v48 }
 0x2a9   : > { %v397_v49 = vpop.trf.xlu1 }
 0x2aa   : > { %413 = vst [vmem:[%s925_s20 + $0x28] sm:$0xff] %v397_v49 }
 0x2b1   : > { %v398_v50 = vpop.trf.xlu1 }
 0x2b2   : > { %414 = vst [vmem:[%s925_s20 + $0x30] sm:$0xff] %v398_v50 }
 0x2b9   : > { %v399_v51 = vpop.trf.xlu1 }
 0x2ba   : > { %415 = vst [vmem:[%s925_s20 + $0x38] sm:$0xff] %v399_v51 }
 0x2c1   : > { %v400_v52 = vpop.trf.xlu1 }
 0x2c2   : > { %416 = vst [vmem:[%s925_s20 + $0x40] sm:$0xff] %v400_v52 }
 0x2c9   : > { %v401_v53 = vpop.trf.xlu1 }
 0x2ca   : > { %417 = vst [vmem:[%s925_s20 + $0x48] sm:$0xff] %v401_v53 }
 0x2d1   : > { %v402_v54 = vpop.trf.xlu1 }
 0x2d2   : > { %418 = vst [vmem:[%s925_s20 + $0x50] sm:$0xff] %v402_v54 }
 0x2d9   : > { %v403_v55 = vpop.trf.xlu1 }
 0x2da   : > { %419 = vst [vmem:[%s925_s20 + $0x58] sm:$0xff] %v403_v55 }
 0x2e1   : > { %v404_v56 = vpop.trf.xlu1 }
 0x2e2   : > { %420 = vst [vmem:[%s925_s20 + $0x60] sm:$0xff] %v404_v56 }
 0x2e9   : > { %v405_v57 = vpop.trf.xlu1 }
 0x2ea   : > { %421 = vst [vmem:[%s925_s20 + $0x68] sm:$0xff] %v405_v57 }
 0x2f1   : > { %v406_v58 = vpop.trf.xlu1 }
 0x2f2   : > { %422 = vst [vmem:[%s925_s20 + $0x70] sm:$0xff] %v406_v58 }
 0x2f9   : > { %v407_v59 = vpop.trf.xlu1 }
 0x2fa   : > { %423 = vst [vmem:[%s925_s20 + $0x78] sm:$0xff] %v407_v59 }
 0x2fb   : > { %722 = shalt.err (!%p719_p10)
}
 0x2fc   : > { %s770_s30 = smov 128   ;;  %s771_s6 = smov 8  }
 0x2fd   : > { %579 = dma.vmem_to_hbm [thread:$0]  (%p856_p3), %s438_s18, 2048, %s440_s19, %s425_s21, %s770_s30, %s770_s30, %s771_s6  }
 0x2fe PF: > { %s454_s7 = sand.u32 1, %s753_s9   ;;  %p985_p12 = scmp.ge.s32.totalorder %s765_s12, 2 }
 0x2ff   : > { %s455_s14 = scalar_lea.sflag [#allocation4], %s454_s7 }
 0x300   : > { %p590_p13 = pnand %p985_p12, %p822_p6 }
 0x302   : > { %p591_p0 = pneg %p590_p13 }
 0x304   : > { %748 = dma.done.wait (%p591_p0), %s455_s14, 2048  }
 0x305   : > { %750 = vsyncadd (%p591_p0), %s455_s14, 4294965248  ;;  %p16_p5 = scmp.ge.s32.totalorder %s840_s23, 4   ;;  %s986_s9 = smov %s757_s10 }
 0x306   : > { %s987_s10 = smov %s761_s11  ;;  %s988_s11 = smov %s852_s28 }
 0x307   : > { %s989_s12 = smov %s840_s23  ;;  %18 = sbr.rel (!%p16_p5) target bundleno = 6 (0x6), region = 77 }
 0x30c   :  { %461 = vsyncpa [#allocation3], 1 }
 0x30d   :  { %463 = vsyncpa [#allocation3 + $0x1], 1 }
 0x30e   :  { %464 = vsyncpa [#allocation6], 1 }
 0x30f   :  { %465 = vsyncpa [#allocation4], 1 }
 0x310   :  { %467 = vsyncpa [#allocation4 + $0x1], 1 }

</bundles_post_ra>
